<compile_context>
chip_gen: v6e
topology: v6e:2x2x1
jax: 0.10.0
libtpu: 0.0.40
codegen_flags: <defaults>
</compile_context>

<pallas_src>
import jax
import jax.numpy as jnp
from jax.experimental import pallas as pl
from jax.experimental.pallas import tpu as pltpu


# ----------------------------------------------------------------------------
# VMEM sizing (review items 2/5/6): scoped limit <= half of physical per-core
# VMEM and <= 48 MiB (safe on v7x's 64 MiB as well as v5e/v6e's 128 MiB); the
# double-buffered tile budget is half of the limit.
# ----------------------------------------------------------------------------
def _default_vmem_limit_bytes():
    try:
        phys = int(pltpu.get_tpu_info().vmem_capacity_bytes)
    except Exception:
        phys = 64 << 20                       # conservative: v7x per-core VMEM
    return int(min(phys // 2, 48 << 20))


_VMEM_LIMIT_BYTES = _default_vmem_limit_bytes()
_TILE_BUDGET_BYTES = _VMEM_LIMIT_BYTES // 2


def _round_up(x, m):
    return -(-x // m) * m


def _choose_hw_tile(hw, c, batch, budget_bytes=_TILE_BUDGET_BYTES):
    """Lane tile for the flattened H*W axis (multiple of 128, VMEM-bounded)."""
    if hw <= 128:
        return hw                             # tiny image: one full-extent block
    # Double-buffered f32 footprint per lane of tile, with sublane round-up:
    #   7 C-plane buffers (mask, x, lamda2, prior, v_out, x_out, lamda2_out),
    #   3 one-plane buffers (lamda1, measurement, lamda1_out) each pad to 8.
    c_pad = _round_up(c, 8)
    bytes_per_lane = 2 * (7 * c_pad + 3 * 8) * 4
    cap = max(128, (budget_bytes // bytes_per_lane) // 128 * 128)
    t = min(cap, _round_up(hw, 128))
    # Keep at least two grid steps in total so both TensorCores of a megacore
    # (v7x) get work even when batch == 1.
    if batch * pl.cdiv(hw, t) < 2:
        t = max(128, min(t, _round_up(pl.cdiv(hw, 2), 128)))
    return t


def _al_net_kernel(scal_ref,                            # SMEM (4,) f32 scalars
                   mask_ref, x_ref, l1_ref, meas_ref,   # VMEM (1,C,T)/(1,1,T)
                   l2_ref, pr_ref,                      # VMEM (1,C,T)
                   v_out_ref, x_out_ref, l1_out_ref, l2_out_ref):
    g1 = scal_ref[0]       # gamma1[0, 0]
    g2 = scal_ref[1]       # self.gamma2 parameter
    gamma0 = scal_ref[2]   # sum_{p<P-1} gamma20[p] + gamma2
    gamma = scal_ref[3]    # gamma0 / gamma1[0, 0]

    mask = mask_ref[...]          # (1, C, T)
    x = x_ref[...]                # (1, C, T)
    l1 = l1_ref[...]              # (1, 1, T)
    meas = meas_ref[...]          # (1, 1, T)
    lamda_2 = l2_ref[...]         # (1, C, T)  == lamda_20[..., -1]
    prior_acc = pr_ref[...]       # (1, C, T)  == sum_{p<P-1}(lamda_20[...,p] + g20[p]*v0[...,p])

    # img = x - lamda_2 / gamma2  (exact divide; kernel is HBM-bound).
    # TODO(synk): Visual_Transformer stand-in: v = img (identity).
    img = x - lamda_2 / g2
    v = img

    # mask_sum = sum(mask**2, 1, keepdim); zeros -> 1  (sublane reduce over C)
    mask_sq_sum = jnp.sum(mask * mask, axis=1, keepdims=True)
    mask_sum = jnp.where(mask_sq_sum == 0.0, jnp.float32(1.0), mask_sq_sum)

    # lamda_1 = lamda_1 - gamma1[0,0] * (measurement - sum(mask*x, 1, keepdim))
    l1_new = l1 - g1 * (meas - jnp.sum(mask * x, axis=1, keepdims=True))
    # lamda_2 = lamda_2 - gamma2 * (x - v)
    l2_new = lamda_2 - g2 * (x - v)

    # xb = -mask*lamda_1 + sum_{p<P-1}(lamda_20[p] + gamma20[p]*v0[p]) + lamda_2 + gamma2*v
    xb = prior_acc + l2_new + g2 * v - mask * l1_new
    x_b = xb / gamma0
    num = meas - jnp.sum(mask * x_b, axis=1, keepdims=True)
    # Exact divide on the (1,1,T) plane (review item 4): fully hidden under the
    # HBM-bound roofline, restores ~1e-5 agreement with the reference.
    x_new = x_b + mask * (num / (mask_sum + gamma))

    v_out_ref[...] = v
    x_out_ref[...] = x_new
    l1_out_ref[...] = l1_new
    l2_out_ref[...] = l2_new


@jax.jit
def sci_backward_resem(params, x0, v0, lamda_10, lamda_20, gamma10, gamma20,
                       mask, measurement, x10, x20, x30, x40, x50):
    """JAX/Pallas equivalent of SCIbackwardresem.forward (iter_number = 1)."""
    gamma1_p, gamma2_p = params          # AL_net parameters, each shape (1,)
    del gamma1_p                         # gamma1 parameter is unused by forward
    B, C, H, W = mask.shape
    P = v0.shape[-1]
    HW = H * W
    f32 = jnp.float32

    # ---- scalar precomputation (plain XLA, exact) ----------------------------
    g1 = gamma10[0, 0].astype(f32)
    g2 = gamma2_p.astype(f32)[0]
    g20 = gamma20[0, 0, :].astype(f32)                         # (P,)
    gamma0 = jnp.sum(g20[:P - 1]) + g2
    gamma = gamma0 / g1
    scal = jnp.stack([g1, g2, gamma0, gamma])                  # -> SMEM

    # ---- prior pre-reduction (kept in XLA; see module docstring TODO) --------
    lamda_2_last = lamda_20[..., P - 1].astype(f32)            # (B, C, H, W)
    if P > 1:
        prior_acc = jnp.sum(lamda_20[..., :P - 1].astype(f32)
                            + g20[:P - 1] * v0[..., :P - 1].astype(f32),
                            axis=-1)                           # (B, C, H, W)
    else:
        prior_acc = jnp.zeros_like(lamda_2_last)

    # ---- flatten spatial dims -> lane-dense (B, C, H*W) layout ---------------
    mask_f = mask.astype(f32).reshape(B, C, HW)
    x_f = x0.astype(f32).reshape(B, C, HW)
    l1_f = lamda_10.astype(f32).reshape(B, 1, HW)
    meas_f = measurement.astype(f32).reshape(B, 1, HW)
    l2_f = lamda_2_last.reshape(B, C, HW)
    pr_f = prior_acc.reshape(B, C, HW)

    T = _choose_hw_tile(HW, C, B)
    n_t = pl.cdiv(HW, T)        # last block may be partial; OOB lanes masked

    smem = pl.BlockSpec(memory_space=pltpu.MemorySpace.SMEM)

    def bspec(ch):
        return pl.BlockSpec((1, ch, T), lambda b, t: (b, 0, t))

    out_shape = (
        jax.ShapeDtypeStruct((B, C, HW), f32),   # v
        jax.ShapeDtypeStruct((B, C, HW), f32),   # x
        jax.ShapeDtypeStruct((B, 1, HW), f32),   # lamda_1
        jax.ShapeDtypeStruct((B, C, HW), f32),   # lamda_2 (lamda_21)
    )
    out_specs = (bspec(C), bspec(C), bspec(1), bspec(C))

    v_, x_new, lamda_1, lamda_21 = pl.pallas_call(
        _al_net_kernel,
        out_shape=out_shape,
        grid_spec=pl.GridSpec(
            grid=(B, n_t),
            in_specs=[smem,
                      bspec(C), bspec(C), bspec(1), bspec(1), bspec(C), bspec(C)],
            out_specs=out_specs,
        ),
        compiler_params=pltpu.CompilerParams(
            dimension_semantics=("parallel", "parallel"),
            vmem_limit_bytes=_VMEM_LIMIT_BYTES,
        ),
    )(scal, mask_f, x_f, l1_f, meas_f, l2_f, pr_f)

    # reshape back to NCHW (metadata only)
    v_ = v_.reshape(B, C, H, W)
    x_new = x_new.reshape(B, C, H, W)
    lamda_1 = lamda_1.reshape(B, 1, H, W)
    lamda_21 = lamda_21.reshape(B, C, H, W)

    # x1..x5 come back from the (identity) transformer unchanged.
    gamma2_out = jnp.broadcast_to(jnp.reshape(gamma2_p.astype(f32), (1, 1)), (B, 1))
    return ([x_new], [v_], x10, x20, x30, x40, x50,
            gamma10, gamma2_out, lamda_1, lamda_21)


def _reference(params, x0, v0, lamda_10, lamda_20, gamma10, gamma20,
               mask, measurement):
    """Pure-JAX reference mirroring the PyTorch math (identity transformer)."""
    _, gamma2_p = params
    g1 = gamma10[0, 0]
    g2 = gamma2_p[0]
    P = v0.shape[-1]

    lamda_2 = lamda_20[..., -1]
    img = x0 - lamda_2 / g2
    v = img
    mask_sum = jnp.sum(mask ** 2, axis=1, keepdims=True)
    mask_sum = jnp.where(mask_sum == 0.0, 1.0, mask_sum)
    l1 = lamda_10 - g1 * (measurement - jnp.sum(mask * x0, axis=1, keepdims=True))
    l2 = lamda_2 - g2 * (x0 - v)
    gamma0 = 0.0
    xb = -mask * l1
    for p in range(P - 1):
        gamma0 = gamma0 + gamma20[0, 0, p]
        xb = xb + lamda_20[..., p] + gamma20[0, 0, p] * v0[..., p]
    gamma0 = gamma0 + g2
    xb = xb + l2 + g2 * v
    gamma = gamma0 / g1
    x_b = xb / gamma0
    x = x_b + mask * (measurement - jnp.sum(mask * x_b, axis=1, keepdims=True)) / (mask_sum + gamma)
    return v, x, l1, l2


if __name__ == "__main__":
    B, C, H, W, P = 2, 4, 16, 16, 3   # P == `number` (prior) in the module

    key = jax.random.PRNGKey(0)
    ks = jax.random.split(key, 12)

    x0 = jax.random.normal(ks[0], (B, C, H, W), jnp.float32)
    v0 = jax.random.normal(ks[1], (B, C, H, W, P), jnp.float32)
    lamda_10 = jax.random.normal(ks[2], (B, 1, H, W), jnp.float32)
    lamda_20 = jax.random.normal(ks[3], (B, C, H, W, P), jnp.float32)
    gamma10 = jax.random.uniform(ks[4], (1, 1), jnp.float32, 0.5, 1.5)
    gamma20 = jax.random.uniform(ks[5], (1, 1, P), jnp.float32, 0.5, 1.5)
    mask = (jax.random.uniform(ks[6], (B, C, H, W), jnp.float32) > 0.5).astype(jnp.float32)
    measurement = jax.random.normal(ks[7], (B, 1, H, W), jnp.float32)
    x10 = jax.random.normal(ks[8], (B, C, H, W), jnp.float32)
    x20 = jax.random.normal(ks[9], (B, C, H, W), jnp.float32)
    x30 = jax.random.normal(ks[10], (B, C, H, W), jnp.float32)
    x40 = jax.random.normal(ks[11], (B, C, H, W), jnp.float32)
    x50 = jnp.zeros((B, C, H, W), jnp.float32)

    # AL_net parameters: torch.nn.Parameter(torch.Tensor([1])) for gamma1, gamma2.
    params = (jnp.ones((1,), jnp.float32), jnp.ones((1,), jnp.float32))

    out = sci_backward_resem(params, x0, v0, lamda_10, lamda_20, gamma10,
                             gamma20, mask, measurement,
                             x10, x20, x30, x40, x50)
    out = jax.block_until_ready(out)

    (x_list, v_list, x1, x2, x3, x4, x5, g1_out, g2_out, l1_out, l21_out) = out

    v_ref, x_ref, l1_ref, l2_ref = _reference(params, x0, v0, lamda_10,
                                              lamda_20, gamma10, gamma20,
                                              mask, measurement)
    # Exact divides in the kernel (no approx reciprocal); remaining deltas are
    # only summation-association differences -> tight tolerance.
    atol = rtol = 1e-5
    assert jnp.allclose(v_list[0], v_ref, atol=atol, rtol=rtol)
    assert jnp.allclose(x_list[0], x_ref, atol=atol, rtol=rtol)
    assert jnp.allclose(l1_out, l1_ref, atol=atol, rtol=rtol)
    assert jnp.allclose(l21_out, l2_ref, atol=atol, rtol=rtol)
    assert g2_out.shape == (B, 1)
    assert g1_out.shape == (1, 1)
    assert x1.shape == (B, C, H, W)

    print("KERNEL_OK")
</pallas_src>

<mosaic_0001>
module attributes {stable_mosaic.version = 11 : i64} {
  func.func @_al_net_kernel(%arg0: i32, %arg1: i32, %arg2: memref<4xf32, #tpu.memory_space<smem>>, %arg3: memref<1x4x256xf32, #tpu.memory_space<vmem>>, %arg4: memref<1x4x256xf32, #tpu.memory_space<vmem>>, %arg5: memref<1x1x256xf32, #tpu.memory_space<vmem>>, %arg6: memref<1x1x256xf32, #tpu.memory_space<vmem>>, %arg7: memref<1x4x256xf32, #tpu.memory_space<vmem>>, %arg8: memref<1x4x256xf32, #tpu.memory_space<vmem>>, %arg9: memref<1x4x256xf32, #tpu.memory_space<vmem>>, %arg10: memref<1x4x256xf32, #tpu.memory_space<vmem>>, %arg11: memref<1x1x256xf32, #tpu.memory_space<vmem>>, %arg12: memref<1x4x256xf32, #tpu.memory_space<vmem>>) attributes {dimension_semantics = [#tpu.dimension_semantics<parallel>, #tpu.dimension_semantics<parallel>], iteration_bounds = array<i64: 2, 1>, scalar_prefetch = 0 : i64, scratch_operands = 0 : i64, tpu.core_type = #tpu.core_type<tc>, window_params = [{transform_indices = @transform_0, window_bounds = array<i64: 4>}, {transform_indices = @transform_1, window_bounds = array<i64: 1, 4, 256>}, {transform_indices = @transform_2, window_bounds = array<i64: 1, 4, 256>}, {transform_indices = @transform_3, window_bounds = array<i64: 1, 1, 256>}, {transform_indices = @transform_4, window_bounds = array<i64: 1, 1, 256>}, {transform_indices = @transform_5, window_bounds = array<i64: 1, 4, 256>}, {transform_indices = @transform_6, window_bounds = array<i64: 1, 4, 256>}, {transform_indices = @transform_7, window_bounds = array<i64: 1, 4, 256>}, {transform_indices = @transform_8, window_bounds = array<i64: 1, 4, 256>}, {transform_indices = @transform_9, window_bounds = array<i64: 1, 1, 256>}, {transform_indices = @transform_10, window_bounds = array<i64: 1, 4, 256>}]} {
    %c0 = arith.constant 0 : index
    %0 = memref.load %arg2[%c0] : memref<4xf32, #tpu.memory_space<smem>>
    %c1 = arith.constant 1 : index
    %1 = memref.load %arg2[%c1] : memref<4xf32, #tpu.memory_space<smem>>
    %c2 = arith.constant 2 : index
    %2 = memref.load %arg2[%c2] : memref<4xf32, #tpu.memory_space<smem>>
    %c3 = arith.constant 3 : index
    %3 = memref.load %arg2[%c3] : memref<4xf32, #tpu.memory_space<smem>>
    %c0_0 = arith.constant 0 : index
    %c0_1 = arith.constant 0 : index
    %c0_2 = arith.constant 0 : index
    %4 = vector.load %arg3[%c0_0, %c0_1, %c0_2] : memref<1x4x256xf32, #tpu.memory_space<vmem>>, vector<1x4x256xf32>
    %c0_3 = arith.constant 0 : index
    %c0_4 = arith.constant 0 : index
    %c0_5 = arith.constant 0 : index
    %5 = vector.load %arg4[%c0_3, %c0_4, %c0_5] : memref<1x4x256xf32, #tpu.memory_space<vmem>>, vector<1x4x256xf32>
    %c0_6 = arith.constant 0 : index
    %c0_7 = arith.constant 0 : index
    %c0_8 = arith.constant 0 : index
    %6 = vector.load %arg5[%c0_6, %c0_7, %c0_8] : memref<1x1x256xf32, #tpu.memory_space<vmem>>, vector<1x1x256xf32>
    %c0_9 = arith.constant 0 : index
    %c0_10 = arith.constant 0 : index
    %c0_11 = arith.constant 0 : index
    %7 = vector.load %arg6[%c0_9, %c0_10, %c0_11] : memref<1x1x256xf32, #tpu.memory_space<vmem>>, vector<1x1x256xf32>
    %c0_12 = arith.constant 0 : index
    %c0_13 = arith.constant 0 : index
    %c0_14 = arith.constant 0 : index
    %8 = vector.load %arg7[%c0_12, %c0_13, %c0_14] : memref<1x4x256xf32, #tpu.memory_space<vmem>>, vector<1x4x256xf32>
    %c0_15 = arith.constant 0 : index
    %c0_16 = arith.constant 0 : index
    %c0_17 = arith.constant 0 : index
    %9 = vector.load %arg8[%c0_15, %c0_16, %c0_17] : memref<1x4x256xf32, #tpu.memory_space<vmem>>, vector<1x4x256xf32>
    %10 = vector.broadcast %1 : f32 to vector<1x4x256xf32>
    %11 = arith.divf %8, %10 : vector<1x4x256xf32>
    %12 = arith.subf %5, %11 : vector<1x4x256xf32>
    %13 = arith.mulf %4, %4 : vector<1x4x256xf32>
    %cst = arith.constant dense<0.000000e+00> : vector<1x256xf32>
    %14 = vector.multi_reduction <add>, %13, %cst [1] : vector<1x4x256xf32> to vector<1x256xf32>
    %15 = vector.shape_cast %14 : vector<1x256xf32> to vector<1x1x256xf32>
    %cst_18 = arith.constant 0.000000e+00 : f32
    %16 = vector.broadcast %cst_18 : f32 to vector<1x1x256xf32>
    %17 = arith.cmpf oeq, %15, %16 : vector<1x1x256xf32>
    %cst_19 = arith.constant 1.000000e+00 : f32
    %18 = vector.broadcast %cst_19 : f32 to vector<1x1x256xf32>
    %19 = arith.select %17, %18, %15 : vector<1x1x256xi1>, vector<1x1x256xf32>
    %20 = arith.mulf %4, %5 : vector<1x4x256xf32>
    %cst_20 = arith.constant dense<0.000000e+00> : vector<1x256xf32>
    %21 = vector.multi_reduction <add>, %20, %cst_20 [1] : vector<1x4x256xf32> to vector<1x256xf32>
    %22 = vector.shape_cast %21 : vector<1x256xf32> to vector<1x1x256xf32>
    %23 = arith.subf %7, %22 : vector<1x1x256xf32>
    %24 = vector.broadcast %0 : f32 to vector<1x1x256xf32>
    %25 = arith.mulf %24, %23 : vector<1x1x256xf32>
    %26 = arith.subf %6, %25 : vector<1x1x256xf32>
    %27 = arith.subf %5, %12 : vector<1x4x256xf32>
    %28 = vector.broadcast %1 : f32 to vector<1x4x256xf32>
    %29 = arith.mulf %28, %27 : vector<1x4x256xf32>
    %30 = arith.subf %8, %29 : vector<1x4x256xf32>
    %31 = arith.addf %9, %30 : vector<1x4x256xf32>
    %32 = vector.broadcast %1 : f32 to vector<1x4x256xf32>
    %33 = arith.mulf %32, %12 : vector<1x4x256xf32>
    %34 = arith.addf %31, %33 : vector<1x4x256xf32>
    %35 = vector.broadcast %26 : vector<1x1x256xf32> to vector<1x4x256xf32>
    %36 = arith.mulf %4, %35 : vector<1x4x256xf32>
    %37 = arith.subf %34, %36 : vector<1x4x256xf32>
    %38 = vector.broadcast %2 : f32 to vector<1x4x256xf32>
    %39 = arith.divf %37, %38 : vector<1x4x256xf32>
    %40 = arith.mulf %4, %39 : vector<1x4x256xf32>
    %cst_21 = arith.constant dense<0.000000e+00> : vector<1x256xf32>
    %41 = vector.multi_reduction <add>, %40, %cst_21 [1] : vector<1x4x256xf32> to vector<1x256xf32>
    %42 = vector.shape_cast %41 : vector<1x256xf32> to vector<1x1x256xf32>
    %43 = arith.subf %7, %42 : vector<1x1x256xf32>
    %44 = vector.broadcast %3 : f32 to vector<1x1x256xf32>
    %45 = arith.addf %19, %44 : vector<1x1x256xf32>
    %46 = arith.divf %43, %45 : vector<1x1x256xf32>
    %47 = vector.broadcast %46 : vector<1x1x256xf32> to vector<1x4x256xf32>
    %48 = arith.mulf %4, %47 : vector<1x4x256xf32>
    %49 = arith.addf %39, %48 : vector<1x4x256xf32>
    %c0_22 = arith.constant 0 : index
    %c0_23 = arith.constant 0 : index
    %c0_24 = arith.constant 0 : index
    %50 = vector.load %arg9[%c0_22, %c0_23, %c0_24] : memref<1x4x256xf32, #tpu.memory_space<vmem>>, vector<1x4x256xf32>
    tpu.vector_store %arg9[%c0_22, %c0_23, %c0_24], %12 {strides = array<i32>} : memref<1x4x256xf32, #tpu.memory_space<vmem>>, vector<1x4x256xf32>,
    %c0_25 = arith.constant 0 : index
    %c0_26 = arith.constant 0 : index
    %c0_27 = arith.constant 0 : index
    %51 = vector.load %arg10[%c0_25, %c0_26, %c0_27] : memref<1x4x256xf32, #tpu.memory_space<vmem>>, vector<1x4x256xf32>
    tpu.vector_store %arg10[%c0_25, %c0_26, %c0_27], %49 {strides = array<i32>} : memref<1x4x256xf32, #tpu.memory_space<vmem>>, vector<1x4x256xf32>,
    %c0_28 = arith.constant 0 : index
    %c0_29 = arith.constant 0 : index
    %c0_30 = arith.constant 0 : index
    %52 = vector.load %arg11[%c0_28, %c0_29, %c0_30] : memref<1x1x256xf32, #tpu.memory_space<vmem>>, vector<1x1x256xf32>
    tpu.vector_store %arg11[%c0_28, %c0_29, %c0_30], %26 {strides = array<i32>} : memref<1x1x256xf32, #tpu.memory_space<vmem>>, vector<1x1x256xf32>,
    %c0_31 = arith.constant 0 : index
    %c0_32 = arith.constant 0 : index
    %c0_33 = arith.constant 0 : index
    %53 = vector.load %arg12[%c0_31, %c0_32, %c0_33] : memref<1x4x256xf32, #tpu.memory_space<vmem>>, vector<1x4x256xf32>
    tpu.vector_store %arg12[%c0_31, %c0_32, %c0_33], %30 {strides = array<i32>} : memref<1x4x256xf32, #tpu.memory_space<vmem>>, vector<1x4x256xf32>,
    return
  }
  func.func @transform_0(%arg0: i32, %arg1: i32) -> i32 {
    %c0_i32 = arith.constant 0 : i32
    %c0_i32_0 = arith.constant 0 : i32
    return %c0_i32 : i32
  }
  func.func @transform_1(%arg0: i32, %arg1: i32) -> (i32, i32, i32) {
    %c0_i32 = arith.constant 0 : i32
    %c0_i32_0 = arith.constant 0 : i32
    return %arg0, %c0_i32, %arg1 : i32, i32, i32
  }
  func.func @transform_2(%arg0: i32, %arg1: i32) -> (i32, i32, i32) {
    %c0_i32 = arith.constant 0 : i32
    %c0_i32_0 = arith.constant 0 : i32
    return %arg0, %c0_i32, %arg1 : i32, i32, i32
  }
  func.func @transform_3(%arg0: i32, %arg1: i32) -> (i32, i32, i32) {
    %c0_i32 = arith.constant 0 : i32
    %c0_i32_0 = arith.constant 0 : i32
    return %arg0, %c0_i32, %arg1 : i32, i32, i32
  }
  func.func @transform_4(%arg0: i32, %arg1: i32) -> (i32, i32, i32) {
    %c0_i32 = arith.constant 0 : i32
    %c0_i32_0 = arith.constant 0 : i32
    return %arg0, %c0_i32, %arg1 : i32, i32, i32
  }
  func.func @transform_5(%arg0: i32, %arg1: i32) -> (i32, i32, i32) {
    %c0_i32 = arith.constant 0 : i32
    %c0_i32_0 = arith.constant 0 : i32
    return %arg0, %c0_i32, %arg1 : i32, i32, i32
  }
  func.func @transform_6(%arg0: i32, %arg1: i32) -> (i32, i32, i32) {
    %c0_i32 = arith.constant 0 : i32
    %c0_i32_0 = arith.constant 0 : i32
    return %arg0, %c0_i32, %arg1 : i32, i32, i32
  }
  func.func @transform_7(%arg0: i32, %arg1: i32) -> (i32, i32, i32) {
    %c0_i32 = arith.constant 0 : i32
    %c0_i32_0 = arith.constant 0 : i32
    return %arg0, %c0_i32, %arg1 : i32, i32, i32
  }
  func.func @transform_8(%arg0: i32, %arg1: i32) -> (i32, i32, i32) {
    %c0_i32 = arith.constant 0 : i32
    %c0_i32_0 = arith.constant 0 : i32
    return %arg0, %c0_i32, %arg1 : i32, i32, i32
  }
  func.func @transform_9(%arg0: i32, %arg1: i32) -> (i32, i32, i32) {
    %c0_i32 = arith.constant 0 : i32
    %c0_i32_0 = arith.constant 0 : i32
    return %arg0, %c0_i32, %arg1 : i32, i32, i32
  }
  func.func @transform_10(%arg0: i32, %arg1: i32) -> (i32, i32, i32) {
    %c0_i32 = arith.constant 0 : i32
    %c0_i32_0 = arith.constant 0 : i32
    return %arg0, %c0_i32, %arg1 : i32, i32, i32
  }
}

</mosaic_0001>

<bundles_post_ra>
// kernel: squeeze.9
= control target key start
LH: loop header
LB: loop body
LE: loop exit
PB: predicated region body
PF: predicated region fallthrough
CT: control target
= control target key end

     0   :  { %vm35_vm0 = vcmask 1043458   ;;  %vm40_vm1 = vcmask 1045508   ;;  %vm45_vm2 = vcmask 1047558   ;;  %s79_s6 = smov 3  ;;  %s82_s7 = smov 12  ;;  %vm4_vm3 = vcmask 1047556   ;;  %s731_s0 = inlined_call_operand.vmem [shape: f32[2,4,16,16,1], index: 0, kind: input, shape index: {}]   ;;  %s732_s1 = inlined_call_operand.vmem [shape: f32[2,4,256], index: 1, kind: output, shape index: {}]  }
   0x1   :  { %v412_v0 = vld [vmem:[%s731_s0 + $0x6] ss:$16 sm:%s79_s6]   ;;  %s87_s12 = smov 48  ;;  %s92_s13 = smov 192  ;;  %vm6_vm4 = vcmask 130048   ;;  %vm49_vm5 = vcmask 1048448  }
   0x2   :  { %v413_v1 = vld [vmem:[%s731_s0 + $0x6] ss:$16 sm:%s82_s7]   ;;  %v414_v3 = vld [vmem:[%s731_s0 - $0x32] ss:$16 sm:%s87_s12]   ;;  %s30_s18 = smov 3  ;;  %s33_s21 = smov 12 }
   0x3   :  { %v85_v2 = vsel %vm35_vm0, %v413_v1, %v412_v0  ;;  %v415_v4 = vld [vmem:[%s731_s0 - $0x32] ss:$16 sm:%s92_s13]   ;;  %v404_v6 = vld [vmem:[%s731_s0 + $0x7] ss:$16 sm:%s30_s18]   ;;  %s38_s22 = smov 48  ;;  %s43_s27 = smov 192 }
   0x4   :  { %v90_v5 = vsel %vm40_vm1, %v414_v3, %v85_v2  ;;  %v405_v8 = vld [vmem:[%s731_s0 + $0x7] ss:$16 sm:%s33_s21]   ;;  %v406_v9 = vld [vmem:[%s731_s0 - $0x31] ss:$16 sm:%s38_s22]   ;;  %s470_s28 = smov 96   ;;  %s103_s2 = smov 3 }
   0x5   :  { %v95_v7 = vsel %vm45_vm2, %v415_v4, %v90_v5  ;;  %v36_v10 = vsel %vm35_vm0, %v405_v8, %v404_v6  ;;  %v407_v11 = vld [vmem:[%s731_s0 - $0x31] ss:$16 sm:%s43_s27]   ;;  %s106_s3 = smov 12  ;;  %v416_v13 = vld [vmem:[%s731_s0 + $0x46] ss:$16 sm:%s103_s2]   ;;  %s111_s8 = smov 48 }
   0x6   :  { %96 = vrot.lane.b32.xlu1 %v95_v7, %s470_s28  ;;  %v41_v12 = vsel %vm40_vm1, %v406_v9, %v36_v10  ;;  %v417_v14 = vld [vmem:[%s731_s0 + $0x46] ss:$16 sm:%s106_s3]   ;;  %s116_s9 = smov 192  ;;  %s54_s14 = smov 3  ;;  %vm98_vm6 = vcmask 917248   ;;  %vm147_vm7 = vcmask 786048  }
   0x7   :  { %v46_v15 = vsel %vm45_vm2, %v407_v11, %v41_v12  ;;  %v109_v16 = vsel %vm35_vm0, %v417_v14, %v416_v13  ;;  %v418_v17 = vld [vmem:[%s731_s0 + $0xe] ss:$16 sm:%s111_s8]   ;;  %s57_s15 = smov 12  ;;  %s471_s16 = smov 112   ;;  %v408_v20 = vld [vmem:[%s731_s0 + $0x47] ss:$16 sm:%s54_s14]  }
   0x8   :  { %v419_v18 = vld [vmem:[%s731_s0 + $0xe] ss:$16 sm:%s116_s9]   ;;  %47 = vrot.lane.b32.xlu0 %v46_v15, %s471_s16  ;;  %v114_v19 = vsel %vm40_vm1, %v418_v17, %v109_v16  ;;  %s62_s19 = smov 48  ;;  %s67_s20 = smov 192  ;;  %vm196_vm8 = vcmask 654848   ;;  %vm245_vm9 = vcmask 523648  }
   0x9   :  { %v119_v21 = vsel %vm45_vm2, %v419_v18, %v114_v19  ;;  %v409_v22 = vld [vmem:[%s731_s0 + $0x47] ss:$16 sm:%s57_s15]   ;;  %v410_v23 = vld [vmem:[%s731_s0 + $0xf] ss:$16 sm:%s62_s19]   ;;  %s152_s25 = smov 3  ;;  %s160_s29 = smov 48 }
   0xa   :  { %120 = vrot.lane.b32.xlu1 %v119_v21, %s470_s28  ;;  %v60_v24 = vsel %vm35_vm0, %v409_v22, %v408_v20  ;;  %v411_v25 = vld [vmem:[%s731_s0 + $0xf] ss:$16 sm:%s67_s20]   ;;  %s155_s28 = smov 12  ;;  %s165_s5 = smov 192  ;;  %vm294_vm10 = vcmask 392448   ;;  %vm343_vm11 = vcmask 261248  }
   0xb   :  { %v65_v26 = vsel %vm40_vm1, %v410_v23, %v60_v24  ;;  %v424_v27 = vld [vmem:[%s731_s0 + $0x45] ss:$16 sm:%s152_s25]   ;;  %s128_s6 = smov 3  ;;  %v426_v31 = vld [vmem:[%s731_s0 + $0xd] ss:$16 sm:%s160_s29]   ;;  %s131_s11 = smov 12 }
   0xc   :  { %v425_v28 = vld [vmem:[%s731_s0 + $0x45] ss:$16 sm:%s155_s28]   ;;  %v70_v29 = vsel %vm45_vm2, %v411_v25, %v65_v26  ;;  %v427_v32 = vld [vmem:[%s731_s0 + $0xd] ss:$16 sm:%s165_s5]   ;;  %s136_s12 = smov 48  ;;  %s141_s15 = smov 192 }
   0xd   :  { %v158_v30 = vsel %vm35_vm0, %v425_v28, %v424_v27  ;;  %71 = vrot.lane.b32.xlu0 %v70_v29, %s471_s16  ;;  %v420_v34 = vld [vmem:[%s731_s0 + $0x5] ss:$16 sm:%s128_s6]   ;;  %s201_s20 = smov 3  ;;  %s204_s21 = smov 12 }
   0xe   :  { %v163_v33 = vsel %vm40_vm1, %v426_v31, %v158_v30  ;;  %v421_v36 = vld [vmem:[%s731_s0 + $0x5] ss:$16 sm:%s131_s11]   ;;  %v422_v37 = vld [vmem:[%s731_s0 - $0x33] ss:$16 sm:%s136_s12]   ;;  %s472_s22 = smov 80   ;;  %s209_s25 = smov 48 }
   0xf   :  { %v168_v35 = vsel %vm45_vm2, %v427_v32, %v163_v33  ;;  %v134_v38 = vsel %vm35_vm0, %v421_v36, %v420_v34  ;;  %v423_v39 = vld [vmem:[%s731_s0 - $0x33] ss:$16 sm:%s141_s15]   ;;  %s214_s26 = smov 192  ;;  %v432_v41 = vld [vmem:[%s731_s0 + $0x44] ss:$16 sm:%s201_s20]   ;;  %s177_s2 = smov 3 }
  0x10   :  { %169 = vrot.lane.b32.xlu1 %v168_v35, %s472_s22  ;;  %v139_v40 = vsel %vm40_vm1, %v422_v37, %v134_v38  ;;  %v433_v42 = vld [vmem:[%s731_s0 + $0x44] ss:$16 sm:%s204_s21]   ;;  %s180_s3 = smov 12  ;;  %s185_s8 = smov 48 }
  0x11   :  { %v144_v43 = vsel %vm45_vm2, %v423_v39, %v139_v40  ;;  %v207_v44 = vsel %vm35_vm0, %v433_v42, %v432_v41  ;;  %v434_v45 = vld [vmem:[%s731_s0 + $0xc] ss:$16 sm:%s209_s25]   ;;  %s190_s9 = smov 192  ;;  %v428_v48 = vld [vmem:[%s731_s0 + $0x4] ss:$16 sm:%s177_s2]   ;;  %s250_s12 = smov 3 }
  0x12   :  { %v435_v46 = vld [vmem:[%s731_s0 + $0xc] ss:$16 sm:%s214_s26]   ;;  %145 = vrot.lane.b32.xlu0 %v144_v43, %s472_s22  ;;  %v212_v47 = vsel %vm40_vm1, %v434_v45, %v207_v44  ;;  %s253_s17 = smov 12  ;;  %s258_s18 = smov 48 }
  0x13   :  { %v217_v49 = vsel %vm45_vm2, %v435_v46, %v212_v47  ;;  %v429_v50 = vld [vmem:[%s731_s0 + $0x4] ss:$16 sm:%s180_s3]   ;;  %v430_v51 = vld [vmem:[%s731_s0 - $0x34] ss:$16 sm:%s185_s8]   ;;  %s473_s19 = smov 64   ;;  %s263_s22 = smov 192 }
  0x14   :  { %218 = vrot.lane.b32.xlu1 %v217_v49, %s473_s19  ;;  %v183_v52 = vsel %vm35_vm0, %v429_v50, %v428_v48  ;;  %v431_v53 = vld [vmem:[%s731_s0 - $0x34] ss:$16 sm:%s190_s9]   ;;  %s226_s23 = smov 3  ;;  %s229_s28 = smov 12 }
  0x15   :  { %v188_v54 = vsel %vm40_vm1, %v430_v51, %v183_v52  ;;  %v440_v55 = vld [vmem:[%s731_s0 + $0x43] ss:$16 sm:%s250_s12]   ;;  %s234_s29 = smov 48  ;;  %v442_v59 = vld [vmem:[%s731_s0 + $0xb] ss:$16 sm:%s258_s18]   ;;  %s239_s5 = smov 192 }
  0x16   :  { %v441_v56 = vld [vmem:[%s731_s0 + $0x43] ss:$16 sm:%s253_s17]   ;;  %v193_v57 = vsel %vm45_vm2, %v431_v53, %v188_v54  ;;  %v443_v60 = vld [vmem:[%s731_s0 + $0xb] ss:$16 sm:%s263_s22]   ;;  %s299_s8 = smov 3  ;;  %s302_s9 = smov 12 }
  0x17   :  { %v256_v58 = vsel %vm35_vm0, %v441_v56, %v440_v55  ;;  %194 = vrot.lane.b32.xlu0 %v193_v57, %s473_s19  ;;  %v436_v62 = vld [vmem:[%s731_s0 + $0x3] ss:$16 sm:%s226_s23]   ;;  %s307_s14 = smov 48  ;;  %s312_s15 = smov 192 }
  0x18   :  { %v261_v61 = vsel %vm40_vm1, %v442_v59, %v256_v58  ;;  %v437_v0 = vld [vmem:[%s731_s0 + $0x3] ss:$16 sm:%s229_s28]   ;;  %v438_v1 = vld [vmem:[%s731_s0 - $0x35] ss:$16 sm:%s234_s29]   ;;  %s474_s16 = smov 48   ;;  %s275_s19 = smov 3 }
  0x19   :  { %v266_v63 = vsel %vm45_vm2, %v443_v60, %v261_v61  ;;  %v232_v2 = vsel %vm35_vm0, %v437_v0, %v436_v62  ;;  %v439_v3 = vld [vmem:[%s731_s0 - $0x35] ss:$16 sm:%s239_s5]   ;;  %v448_v5 = vld [vmem:[%s731_s0 + $0x42] ss:$16 sm:%s299_s8]   ;;  %s278_s24 = smov 12  ;;  %s283_s25 = smov 48 }
  0x1a   :  { %267 = vrot.lane.b32.xlu1 %v266_v63, %s474_s16  ;;  %v237_v4 = vsel %vm40_vm1, %v438_v1, %v232_v2  ;;  %v449_v6 = vld [vmem:[%s731_s0 + $0x42] ss:$16 sm:%s302_s9]   ;;  %s288_s30 = smov 192  ;;  %s348_s4 = smov 3 }
  0x1b   :  { %v242_v7 = vsel %vm45_vm2, %v439_v3, %v237_v4  ;;  %v305_v8 = vsel %vm35_vm0, %v449_v6, %v448_v5  ;;  %v450_v9 = vld [vmem:[%s731_s0 + $0xa] ss:$16 sm:%s307_s14]   ;;  %v444_v12 = vld [vmem:[%s731_s0 + $0x2] ss:$16 sm:%s275_s19]   ;;  %s351_s5 = smov 12  ;;  %s356_s10 = smov 48 }
  0x1c   :  { %v451_v10 = vld [vmem:[%s731_s0 + $0xa] ss:$16 sm:%s312_s15]   ;;  %243 = vrot.lane.b32.xlu0 %v242_v7, %s474_s16  ;;  %v310_v11 = vsel %vm40_vm1, %v450_v9, %v305_v8  ;;  %s361_s11 = smov 192  ;;  %s475_s12 = smov 32  }
  0x1d   :  { %v315_v13 = vsel %vm45_vm2, %v451_v10, %v310_v11  ;;  %v445_v14 = vld [vmem:[%s731_s0 + $0x2] ss:$16 sm:%s278_s24]   ;;  %v446_v15 = vld [vmem:[%s731_s0 - $0x36] ss:$16 sm:%s283_s25]   ;;  %s324_s15 = smov 3  ;;  %s327_s20 = smov 12 }
  0x1e   :  { %316 = vrot.lane.b32.xlu1 %v315_v13, %s475_s12  ;;  %v281_v16 = vsel %vm35_vm0, %v445_v14, %v444_v12  ;;  %v447_v17 = vld [vmem:[%s731_s0 - $0x36] ss:$16 sm:%s288_s30]   ;;  %s332_s21 = smov 48  ;;  %s337_s26 = smov 192 }
  0x1f   :  { %v286_v18 = vsel %vm40_vm1, %v446_v15, %v281_v16  ;;  %v456_v19 = vld [vmem:[%s731_s0 + $0x41] ss:$16 sm:%s348_s4]   ;;  %v458_v23 = vld [vmem:[%s731_s0 + $0x9] ss:$16 sm:%s356_s10]   ;;  %s476_s6 = smov 16  }
  0x20   :  { %v457_v20 = vld [vmem:[%s731_s0 + $0x41] ss:$16 sm:%s351_s5]   ;;  %v291_v21 = vsel %vm45_vm2, %v447_v17, %v286_v18  ;;  %v459_v24 = vld [vmem:[%s731_s0 + $0x9] ss:$16 sm:%s361_s11]  }
  0x21   :  { %v354_v22 = vsel %vm35_vm0, %v457_v20, %v456_v19  ;;  %292 = vrot.lane.b32.xlu0 %v291_v21, %s475_s12  ;;  %v452_v26 = vld [vmem:[%s731_s0 + $0x1] ss:$16 sm:%s324_s15]   ;;  %v2_v27 = vld [vmem:[%s731_s0] ss:$8 sm:$0xf]  }
  0x22   :  { %v359_v25 = vsel %vm40_vm1, %v458_v23, %v354_v22  ;;  %v453_v29 = vld [vmem:[%s731_s0 + $0x1] ss:$16 sm:%s327_s20]   ;;  %v454_v30 = vld [vmem:[%s731_s0 - $0x37] ss:$16 sm:%s332_s21]  }
  0x23   :  { %v364_v28 = vsel %vm45_vm2, %v459_v24, %v359_v25  ;;  %v330_v31 = vsel %vm35_vm0, %v453_v29, %v452_v26  ;;  %v455_v32 = vld [vmem:[%s731_s0 - $0x37] ss:$16 sm:%s337_s26]   ;;  %v3_v33 = vld [vmem:[%s731_s0] ss:$8 sm:$0xf0]  }
  0x24   :  { %365 = vrot.lane.b32.xlu1 %v364_v28, %s476_s6  ;;  %v335_v34 = vsel %vm40_vm1, %v454_v30, %v330_v31  ;;  %v5_v35 = vsel %vm4_vm3, %v3_v33, %v2_v27  ;;  %v402_v36 = vld [vmem:[%s731_s0 + $0x40] ss:$8 sm:$0xf]  }
  0x25   :  { %v403_v37 = vld [vmem:[%s731_s0 + $0x40] ss:$8 sm:$0xf0]   ;;  %v340_v38 = vsel %vm45_vm2, %v455_v32, %v335_v34  ;;  %7 = vst.msk [vmem:[#allocation0] ss:$8 sm:$0x3] %vm6_vm4, %v5_v35  }
  0x26   :  { %9 = vst.msk [vmem:[#allocation0 - $0xf] ss:$8 sm:$0xc] %vm6_vm4, %v5_v35   ;;  %11 = vst.msk [vmem:[#allocation0 - $0x1e] ss:$8 sm:$0x30] %vm6_vm4, %v5_v35   ;;  %v19_v39 = vsel %vm4_vm3, %v403_v37, %v402_v36  ;;  %341 = vrot.lane.b32.xlu0 %v340_v38, %s476_s6 }
  0x27   :  { %13 = vst.msk [vmem:[#allocation0 - $0x2d] ss:$8 sm:$0xc0] %vm6_vm4, %v5_v35   ;;  %22 = vst.msk [vmem:[#allocation0 + $0x10] ss:$8 sm:$0x3] %vm6_vm4, %v19_v39  }
  0x28   :  { %24 = vst.msk [vmem:[#allocation0 + $0x1] ss:$8 sm:$0xc] %vm6_vm4, %v19_v39   ;;  %26 = vst.msk [vmem:[#allocation0 - $0xe] ss:$8 sm:$0x30] %vm6_vm4, %v19_v39  }
  0x29   :  { %28 = vst.msk [vmem:[#allocation0 - $0x1d] ss:$8 sm:$0xc0] %vm6_vm4, %v19_v39  }
  0x78   :  { %v97_v40 = vpop.permute.xlu1 %96  }
  0x7a   :  { %v48_v41 = vpop.permute.xlu0 %47  }
  0x7b   :  { %50 = vst.msk [vmem:[#allocation0] sm:$0xf] %vm49_vm5, %v48_v41   ;;  %52 = vst.msk [vmem:[#allocation0 + $0x4] sm:$0xf0] %vm49_vm5, %v48_v41  }
  0x7c   :  { %v121_v42 = vpop.permute.xlu1 %120   ;;  %99 = vst.msk [vmem:[#allocation0] sm:$0xf] %vm98_vm6, %v97_v40   ;;  %101 = vst.msk [vmem:[#allocation0 + $0x4] sm:$0xf0] %vm98_vm6, %v97_v40  }
  0x7f   :  { %v72_v43 = vpop.permute.xlu0 %71  }
  0x80   :  { %75 = vst.msk [vmem:[#allocation0 + $0x10] sm:$0xf] %vm49_vm5, %v72_v43   ;;  %77 = vst.msk [vmem:[#allocation0 + $0x14] sm:$0xf0] %vm49_vm5, %v72_v43  }
  0x81   :  { %124 = vst.msk [vmem:[#allocation0 + $0x10] sm:$0xf] %vm98_vm6, %v121_v42   ;;  %126 = vst.msk [vmem:[#allocation0 + $0x14] sm:$0xf0] %vm98_vm6, %v121_v42  }
  0x82   :  { %v170_v44 = vpop.permute.xlu1 %169  }
  0x83   :  { %173 = vst.msk [vmem:[#allocation0 + $0x10] sm:$0xf] %vm147_vm7, %v170_v44   ;;  %175 = vst.msk [vmem:[#allocation0 + $0x14] sm:$0xf0] %vm147_vm7, %v170_v44  }
  0x84   :  { %v146_v45 = vpop.permute.xlu0 %145  }
  0x85   :  { %148 = vst.msk [vmem:[#allocation0] sm:$0xf] %vm147_vm7, %v146_v45   ;;  %150 = vst.msk [vmem:[#allocation0 + $0x4] sm:$0xf0] %vm147_vm7, %v146_v45  }
  0x86   :  { %v219_v46 = vpop.permute.xlu1 %218  }
  0x87   :  { %222 = vst.msk [vmem:[#allocation0 + $0x10] sm:$0xf] %vm196_vm8, %v219_v46   ;;  %224 = vst.msk [vmem:[#allocation0 + $0x14] sm:$0xf0] %vm196_vm8, %v219_v46  }
  0x89   :  { %v195_v47 = vpop.permute.xlu0 %194  }
  0x8a   :  { %197 = vst.msk [vmem:[#allocation0] sm:$0xf] %vm196_vm8, %v195_v47   ;;  %199 = vst.msk [vmem:[#allocation0 + $0x4] sm:$0xf0] %vm196_vm8, %v195_v47  }
  0x8c   :  { %v268_v48 = vpop.permute.xlu1 %267  }
  0x8d   :  { %271 = vst.msk [vmem:[#allocation0 + $0x10] sm:$0xf] %vm245_vm9, %v268_v48   ;;  %273 = vst.msk [vmem:[#allocation0 + $0x14] sm:$0xf0] %vm245_vm9, %v268_v48  }
  0x8e   :  { %v244_v49 = vpop.permute.xlu0 %243  }
  0x8f   :  { %246 = vst.msk [vmem:[#allocation0] sm:$0xf] %vm245_vm9, %v244_v49   ;;  %248 = vst.msk [vmem:[#allocation0 + $0x4] sm:$0xf0] %vm245_vm9, %v244_v49  }
  0x90   :  { %v317_v50 = vpop.permute.xlu1 %316  }
  0x91   :  { %320 = vst.msk [vmem:[#allocation0 + $0x10] sm:$0xf] %vm294_vm10, %v317_v50   ;;  %322 = vst.msk [vmem:[#allocation0 + $0x14] sm:$0xf0] %vm294_vm10, %v317_v50  }
  0x93   :  { %v293_v51 = vpop.permute.xlu0 %292  }
  0x94   :  { %295 = vst.msk [vmem:[#allocation0] sm:$0xf] %vm294_vm10, %v293_v51   ;;  %297 = vst.msk [vmem:[#allocation0 + $0x4] sm:$0xf0] %vm294_vm10, %v293_v51  }
  0x96   :  { %v366_v52 = vpop.permute.xlu1 %365  }
  0x97   :  { %369 = vst.msk [vmem:[#allocation0 + $0x10] sm:$0xf] %vm343_vm11, %v366_v52   ;;  %371 = vst.msk [vmem:[#allocation0 + $0x14] sm:$0xf0] %vm343_vm11, %v366_v52  }
  0x98   :  { %v342_v53 = vpop.permute.xlu0 %341  }
  0x99   :  { %344 = vst.msk [vmem:[#allocation0] sm:$0xf] %vm343_vm11, %v342_v53   ;;  %346 = vst.msk [vmem:[#allocation0 + $0x4] sm:$0xf0] %vm343_vm11, %v342_v53  }
  0x9e   :  { %v387_v54 = vld [vmem:[#allocation0 + $0x10] sm:$0xf]  ;;  %v394_v55 = vld [vmem:[#allocation0 + $0x18] sm:$0xf] }
  0x9f   :  { %461 = vst [vmem:[%s732_s1 + $0x8] sm:$0xf] %v387_v54  ;;  %462 = vst [vmem:[%s732_s1 + $0xc] sm:$0xf] %v394_v55 }
  0xa0   :  { %v376_v56 = vld [vmem:[#allocation0] sm:$0xf]  ;;  %v381_v57 = vld [vmem:[#allocation0 + $0x8] sm:$0xf] }
  0xa1   :  { %379 = vst [vmem:[%s732_s1] sm:$0xf] %v376_v56  ;;  %460 = vst [vmem:[%s732_s1 + $0x4] sm:$0xf] %v381_v57 }

// kernel: sci_backward_resem.1
= control target key start
LH: loop header
LB: loop body
LE: loop exit
PB: predicated region body
PF: predicated region fallthrough
CT: control target
= control target key end

     0   :  { %16 = vsyncpa [#allocation3], 0  ;;  %s1340_s13 = smov 0   ;;  %s1342_s14 = smov 0   ;;  %s1479_s0 = inlined_call_operand.vmem [shape: f32[4], index: 0, kind: input, shape index: {}]   ;;  %s1480_s1 = inlined_call_operand.vmem [shape: f32[2,4,256], index: 1, kind: input, shape index: {}]   ;;  %s1481_s2 = inlined_call_operand.vmem [shape: f32[2,4,256], index: 2, kind: input, shape index: {}]   ;;  %s1482_s3 = inlined_call_operand.vmem [shape: f32[2,1,256], index: 3, kind: input, shape index: {}]   ;;  %s1483_s4 = inlined_call_operand.vmem [shape: f32[2,1,256], index: 4, kind: input, shape index: {}]   ;;  %s1484_s5 = inlined_call_operand.vmem [shape: f32[2,4,256], index: 5, kind: input, shape index: {}]   ;;  %s1485_s6 = inlined_call_operand.vmem [shape: f32[2,4,256], index: 6, kind: input, shape index: {}]   ;;  %s1486_s7 = inlined_call_operand.vmem [shape: f32[2,4,256], index: 7, kind: output, shape index: {0}]   ;;  %s1487_s8 = inlined_call_operand.vmem [shape: f32[2,4,256], index: 8, kind: output, shape index: {1}]   ;;  %s1488_s9 = inlined_call_operand.vmem [shape: f32[2,1,256], index: 9, kind: output, shape index: {2}]   ;;  %s1489_s10 = inlined_call_operand.vmem [shape: f32[2,4,256], index: 10, kind: output, shape index: {3}]  }
   0x1   :  { %s1344_s15 = smov 0  }
   0x2 LB: > { %s1162_s16 = sadd.s32 4294967295, %s1281_s15   ;;  %s34_s17 = sadd.s32 1, %s1277_s14  ;;  %s1281_s15 = sphi %s1344_s15, %s22_s15   ;;  %s1277_s14 = sphi %s1342_s14, %s1493_s14   ;;  %s1273_s13 = sphi %s1340_s13, %s1492_s13  }
   0x3   : > { %p36_p0 = scmp.ge.s32.totalorder %s34_s17, 2  ;;  %p1164_p1 = scmp.ge.s32.totalorder %s1281_s15, 1 }
   0x4   : > { %p340_p2 = scmp.lt.s32.totalorder %s1281_s15, 3  ;;  %p1365_p4 = scmp.eq.s32.totalorder %s1162_s16, 0 }
   0x5   : > { %s1495_s17 = smov (%p36_p0, %s34_s17), 0  ;;  %s353_s22 = sshll.u32 %s1479_s0, 4  ;;  %s354_s22 = int_to_ptr.vmem [resolvable:$true] %s353_s22 }
   0x6   : > { %p1361_p3 = pnand %p1164_p1, %p340_p2  ;;  %s1240_s23 = scalar_lea.vmem %s354_s22, 16 }
   0x7   : > { %p1241_p7 = scmp.ne.s32.totalorder %s354_s22, %s1240_s23  ;;  %p1248_p11 = scmp.lt.s32.totalorder %s354_s22, %s354_s22 }
   0x8   : > { %p1202_p5 = pneg %p1361_p3  ;;  %p1249_p12 = scmp.lt.s32.totalorder %s1240_s23, %s1240_s23 }
   0xa   : > { %p1203_p6 = pnand %p1365_p4, %p1202_p5  ;;  %p1250_p13 = por %p1249_p12, %p1248_p11 }
   0xc   : > { %p1242_p8 = pneg %p1203_p6 }
   0xe   : > { %p1243_p9 = pnand %p1242_p8, %p1241_p7 }
  0x10   : > { %p1244_p10 = pneg %p1243_p9 }
  0x12   : > { %p1251_p0 = pnand %p1250_p13, %p1244_p10 }
  0x14   : > { %1254 = shalt.err (!%p1251_p0)
}
  0x15   : > { %s1283_s24 = smov [#allocation2]   ;;  %442 = sbr.rel (%p1361_p3) target bundleno = 111 (0x6f), region = 48 }
  0x16   : > { %1205 = dma.vmem_to_smem (!%p1203_p6), %s354_s22, 16, %s1283_s24, [#allocation3]  }
  0x1a   : > { %1268 = dma.done.wait (%p1365_p4), [#allocation3], 16  }
  0x1b   : > { %1270 = vsyncadd (%p1365_p4), [#allocation3], 4294967280 }
  0x1c   : > { %448 = sfence }
  0x1d   : > { %p559_p1 = scmp.lt.s32.totalorder %s1273_s13, 1  ;;  %s1186_s25 = sld [smem:[#allocation2 + $0x1]]  ;;  %vm673_vm0 = vcmask 1043456   ;;  %v716_v17 = vlaneseq  ;;  %v1284_v21 = vmov 1966171168  }
  0x1e   : > { %v714_v22 = vunpack.c.l.s4 %v1284_v21  ;;  %s1413_s20 = sld [smem:[#allocation2 + $0x2]] }
  0x1f   : > { %s1497_s13 = smov (!%p559_p1, %s1273_s13), 1  ;;  %v1415_v31 = vshrl.u32 %v716_v17, 7  ;;  %s655_s22 = sld [smem:[#allocation2]]  ;;  %vm831_vm3 = vcmp.lt.s32.totalorder %v716_v17, 256 }
  0x20   : > { %s1387_s26 = sshll.u32 %s1497_s13, 3  ;;  %v715_v30 = vunpack.c.0.s8 %v714_v22  ;;  %s1418_s21 = sshll.u32 %s1497_s13, 1 }
  0x21   : > { %s566_s29 = scalar_lea.vmem %s1480_s1, %s1387_s26  ;;  %s576_s12 = scalar_lea.vmem %s1481_s2, %s1387_s26  ;;  %v741_v58 = vsub.s32 0, %v1415_v31  ;;  %v745_v59 = vsub.s32 1, %v1415_v31 }
  0x22   : > { %v1397_v0 = vld [vmem:[%s566_s29] sm:$0xff]  ;;  %s604_s19 = scalar_lea.vmem %s1484_s5, %s1387_s26  ;;  %v1425_v39 = vsub.s32 %v715_v30, %v1415_v31  ;;  %s594_s13 = scalar_lea.vmem %s1483_s4, %s1418_s21 }
  0x23   : > { %v660_v1 = vld [vmem:[%s576_s12] sm:$0xff]  ;;  %v1399_v2 = vstv %s1186_s25  ;;  %v669_v3 = vmul.f32 %v1397_v0, %v1397_v0  ;;  %s624_s25 = scalar_lea.vmem %s1486_s7, %s1387_s26  ;;  %s585_s11 = scalar_lea.vmem %s1482_s3, %s1418_s21 }
  0x24   : > { %1234 = vrcp.f32 %v1399_v2  ;;  %v692_v4 = vmul.f32 %v660_v1, %v1397_v0  ;;  %v663_v27 = vld [vmem:[%s604_s19] sm:$0xff]  ;;  %v751_v45 = vstv %s1413_s20  ;;  %s1438_s12 = sld [smem:[#allocation2 + $0x3]]  ;;  %s614_s19 = scalar_lea.vmem %s1485_s6, %s1387_s26 }
  0x25   : > { %v671_v5 = vcombine.high %v669_v3, %v669_v3  ;;  %v674_v6 = vsel %vm673_vm0, %v669_v3, 0.0  ;;  %v662_v48 = vld [vmem:[%s594_s13] sm:$0x3]  ;;  %1236 = vrcp.f32 %v751_v45  ;;  %s653_s24 = scalar_lea.vmem %s1489_s10, %s1387_s26  ;;  %v729_v53 = vstv %s655_s22  ;;  %s643_s28 = scalar_lea.vmem %s1488_s9, %s1418_s21 }
  0x26   : > { %v694_v7 = vcombine.high %v692_v4, %v692_v4  ;;  %v696_v8 = vsel %vm673_vm0, %v692_v4, 0.0  ;;  %v675_v9 = vrot.slane %v674_v6, 4  ;;  %v661_v55 = vld [vmem:[%s585_s11] sm:$0x3]  ;;  %s634_s13 = scalar_lea.vmem %s1487_s8, %s1387_s26 }
  0x27   : > { %v697_v10 = vrot.slane %v696_v8, 4  ;;  %v681_v11 = vsel %vm673_vm0, %v671_v5, 0.0  ;;  %v664_v56 = vld [vmem:[%s614_s19] sm:$0xff] }
  0x28   : > { %v703_v12 = vsel %vm673_vm0, %v694_v7, 0.0  ;;  %v682_v13 = vrot.slane %v681_v11, 4  ;;  %v676_v16 = vadd.f32 %v675_v9, %v674_v6 }
  0x29   : > { %v698_v14 = vadd.f32 %v697_v10, %v696_v8  ;;  %v704_v15 = vrot.slane %v703_v12, 4 }
  0x2a   : > { %v683_v18 = vadd.f32 %v682_v13, %v681_v11  ;;  %v677_v25 = vrot.slane %v676_v16, 2  ;;  %v791_v63 = vstv %s1438_s12 }
  0x2b   : > { %v699_v19 = vrot.slane %v698_v14, 2  ;;  %v705_v20 = vadd.f32 %v704_v15, %v703_v12 }
  0x2c   : > { %v684_v26 = vrot.slane %v683_v18, 2  ;;  %v678_v36 = vadd.f32 %v677_v25, %v676_v16 }
  0x2d   : > { %v700_v23 = vadd.f32 %v699_v19, %v698_v14  ;;  %v706_v24 = vrot.slane %v705_v20, 2 }
  0x2e   : > { %v685_v37 = vadd.f32 %v684_v26, %v683_v18  ;;  %v679_v42 = vrot.slane %v678_v36, 1 }
  0x2f   : > { %v701_v28 = vrot.slane %v700_v23, 1  ;;  %v707_v29 = vadd.f32 %v706_v24, %v705_v20 }
  0x30   : > { %v686_v43 = vrot.slane %v685_v37, 1  ;;  %v680_v50 = vadd.f32 %v679_v42, %v678_v36 }
  0x31   : > { %v1235_v32 = vpop.eup %1234  ;;  %v702_v33 = vadd.f32 %v701_v28, %v700_v23  ;;  %v708_v34 = vrot.slane %v707_v29, 1 }
  0x32   : > { %v667_v35 = vmul.f32 %v1235_v32, %v663_v27  ;;  %v687_v51 = vadd.f32 %v686_v43, %v685_v37  ;;  %vm688_vm1 = vcmp.eq.f32.partialorder %v680_v50, 0.0  ;;  %v1237_v11 = vpop.eup %1236 }
  0x33   : > { %v709_v38 = vadd.f32 %v708_v34, %v707_v29 }
  0x34   : > { %v668_v40 = vsub.f32 %v660_v1, %v667_v35  ;;  %vm689_vm2 = vcmp.eq.f32.partialorder %v687_v51, 0.0 }
  0x35   : > { %v712_v41 = vcombine.low %v702_v33, %v709_v38  ;;  %v691_v3 = vsel %vm689_vm2, 1.0, %v687_v51 }
  0x36   : > { %v732_v44 = vsub.f32 %v660_v1, %v668_v40  ;;  %827 = vst [vmem:[%s624_s25] sm:$0xff] %v668_v40  ;;  %v736_v60 = vmul.f32 %v668_v40, %v1399_v2  ;;  %v690_v1 = vsel %vm688_vm1, 1.0, %v680_v50  ;;  %v793_v9 = vadd.f32 %v791_v63, %v691_v3 }
  0x37   : > { %v719_v46 = vrot.slane %v712_v41, %v1425_v39  ;;  %v792_v8 = vadd.f32 %v791_v63, %v690_v1 }
  0x38   : > { %v733_v47 = vmul.f32 %v732_v44, %v1399_v2 }
  0x39   : > { %v726_v49 = vrot.slane %v719_v46, %v1425_v39  ;;  %v796_v13 = vcombine.low %v792_v8, %v793_v9 }
  0x3a   : > { %v734_v52 = vsub.f32 %v663_v27, %v733_v47 }
  0x3b   : > { %v728_v54 = vsub.f32 %v662_v48, %v726_v49  ;;  %v803_v15 = vrot.slane %v796_v13, %v1425_v39 }
  0x3c   : > { %834 = vst [vmem:[%s653_s24] sm:$0xff] %v734_v52  ;;  %v735_v62 = vadd.f32 %v734_v52, %v664_v56 }
  0x3d   : > { %v730_v57 = vmul.f32 %v729_v53, %v728_v54  ;;  %v810_v22 = vrot.slane %v803_v15, %v1425_v39 }
  0x3e   : > { %v737_v6 = vadd.f32 %v736_v60, %v735_v62 }
  0x3f   : > { %v731_v61 = vsub.f32 %v661_v55, %v730_v57  ;;  %1238 = vrcp.f32 %v810_v22 }
  0x41   : > { %v742_v4 = vrot.slane %v731_v61, %v741_v58  ;;  %v746_v5 = vrot.slane %v731_v61, %v745_v59  ;;  %833 = vst.msk [vmem:[%s643_s28] sm:$0x3] %vm831_vm3, %v731_v61 }
  0x43   : > { %v747_v7 = vcombine.low %v742_v4, %v746_v5 }
  0x45   : > { %v749_v10 = vmul.f32 %v747_v7, %v1397_v0 }
  0x47   : > { %v750_v12 = vsub.f32 %v737_v6, %v749_v10 }
  0x49   : > { %v753_v14 = vmul.f32 %v1237_v11, %v750_v12 }
  0x4b   : > { %v754_v2 = vmul.f32 %v753_v14, %v1397_v0 }
  0x4c   : > { %v1239_v35 = vpop.eup %1238 }
  0x4d   : > { %v756_v16 = vcombine.high %v754_v2, %v754_v2  ;;  %v758_v17 = vsel %vm673_vm0, %v754_v2, 0.0 }
  0x4e   : > { %v759_v18 = vrot.slane %v758_v17, 4 }
  0x4f   : > { %v765_v19 = vsel %vm673_vm0, %v756_v16, 0.0 }
  0x50   : > { %v760_v20 = vadd.f32 %v759_v18, %v758_v17  ;;  %v766_v21 = vrot.slane %v765_v19, 4 }
  0x52   : > { %v761_v23 = vrot.slane %v760_v20, 2  ;;  %v767_v24 = vadd.f32 %v766_v21, %v765_v19 }
  0x54   : > { %v762_v25 = vadd.f32 %v761_v23, %v760_v20  ;;  %v768_v26 = vrot.slane %v767_v24, 2 }
  0x56   : > { %v763_v27 = vrot.slane %v762_v25, 1  ;;  %v769_v28 = vadd.f32 %v768_v26, %v767_v24 }
  0x58   : > { %v764_v29 = vadd.f32 %v763_v27, %v762_v25  ;;  %v770_v30 = vrot.slane %v769_v28, 1 }
  0x5a   : > { %v771_v31 = vadd.f32 %v770_v30, %v769_v28 }
  0x5c   : > { %v774_v32 = vcombine.low %v764_v29, %v771_v31 }
  0x5e   : > { %v781_v33 = vrot.slane %v774_v32, %v1425_v39 }
  0x60   : > { %v788_v34 = vrot.slane %v781_v33, %v1425_v39 }
  0x62   : > { %v790_v36 = vsub.f32 %v662_v48, %v788_v34 }
  0x64   : > { %v813_v37 = vmul.f32 %v1239_v35, %v790_v36 }
  0x66   : > { %v818_v38 = vrot.slane %v813_v37, %v741_v58  ;;  %v822_v40 = vrot.slane %v813_v37, %v745_v59 }
  0x68   : > { %v823_v41 = vcombine.low %v818_v38, %v822_v40 }
  0x6a   : > { %v825_v42 = vmul.f32 %v823_v41, %v1397_v0 }
  0x6c   : > { %v826_v43 = vadd.f32 %v825_v42, %v753_v14 }
  0x6e   : > { %828 = vst [vmem:[%s634_s13] sm:$0xff] %v826_v43 }
  0x6f PF: > { %s22_s15 = sadd.s32 1, %s1281_s15   ;;  %s1492_s13 = smov %s1277_s14 }
  0x70   : > { %p19_p2 = scmp.ge.s32.totalorder %s22_s15, 4   ;;  %s1493_s14 = smov %s1495_s17 }
  0x72   :  { %21 = sbr.rel (!%p19_p2) target bundleno = 2 (0x2), region = 134 }
  0x77   :  { %938 = vsyncpa [#allocation3], 1 }
  0x78   :  { %940 = vsyncpa [#allocation3 + $0x1], 1 }

</bundles_post_ra>
